<compile_context>
chip_gen: v7x
topology: tpu7x:2x2x1
jax: 0.10.0
libtpu: 0.0.40
codegen_flags: <defaults>
</compile_context>

<pallas_src>
import functools

import jax
import jax.numpy as jnp
from jax.experimental import pallas as pl
from jax.experimental.pallas import tpu as pltpu


_LANE = 128                      # vreg lane width
_SUBLANE = 8                     # vreg sublane depth
_BLOCK_BYTE_BUDGET = 2 << 20     # ~2 MiB per block (x4 double-buffered in+out)


def _round_up(x, m):
    return ((x + m - 1) // m) * m


def _choose_tiles(R, N, itemsize):
    """Pick (row_block, col_block) so one block is ~_BLOCK_BYTE_BUDGET bytes."""
    n_pad = _round_up(N, _LANE)
    # Column tile: as many 128-lane groups as fit the budget with full rows.
    tn = (_BLOCK_BYTE_BUDGET // max(1, R * itemsize)) // _LANE * _LANE
    tn = max(_LANE, min(tn, n_pad))
    # Row tile: full R unless even a 128-wide column tile blows the budget;
    # then split rows in sublane (8) multiples (ragged last block is masked).
    if R * tn * itemsize > _BLOCK_BYTE_BUDGET and R > _SUBLANE:
        rb = (_BLOCK_BYTE_BUDGET // (tn * itemsize)) // _SUBLANE * _SUBLANE
        rb = max(_SUBLANE, min(rb, R))
    else:
        rb = R
    return rb, tn


def _normalize_kernel(x_ref, scale_ref, shift_ref, o_ref):
    # x: (rb, tn) in input dtype; scale/shift: (rb, 1) f32, lane-broadcast.
    x = x_ref[...].astype(jnp.float32)
    o_ref[...] = (x * scale_ref[...] + shift_ref[...]).astype(o_ref.dtype)


@jax.jit
def constant_normalize(x, mean, std):
    """(x - mean) / (std + 1e-5) over an NCHW tensor, per-channel constants."""
    B, C, H, W = x.shape
    R = B * C
    N = H * W

    # Free (contiguous) reshape: rows ordered r = b*C + c, lanes = spatial.
    x2 = x.reshape(R, N)

    # Affine form of the normalize, computed on the tiny (C,) constants.
    scale = 1.0 / (std.astype(jnp.float32) + 1e-5)          # (C,)
    shift = -mean.astype(jnp.float32) * scale                # (C,)
    scale_col = jnp.tile(scale, B).reshape(R, 1)             # row r -> channel r % C
    shift_col = jnp.tile(shift, B).reshape(R, 1)

    rb, tn = _choose_tiles(R, N, x.dtype.itemsize)
    grid = (pl.cdiv(R, rb), pl.cdiv(N, tn))

    out = pl.pallas_call(
        _normalize_kernel,
        grid=grid,
        out_shape=jax.ShapeDtypeStruct((R, N), x.dtype),
        in_specs=[
            pl.BlockSpec((rb, tn), lambda i, j: (i, j)),
            pl.BlockSpec((rb, 1), lambda i, j: (i, 0)),
            pl.BlockSpec((rb, 1), lambda i, j: (i, 0)),
        ],
        out_specs=pl.BlockSpec((rb, tn), lambda i, j: (i, j)),
        compiler_params=pltpu.CompilerParams(
            dimension_semantics=("parallel", "parallel")),
    )(x2, scale_col, shift_col)

    return out.reshape(B, C, H, W)


if __name__ == "__main__":
    key = jax.random.PRNGKey(0)
    x = jax.random.uniform(key, (2, 3, 32, 32), jnp.float32)

    mean = jnp.array([0.485, 0.456, 0.406], jnp.float32)
    std = jnp.array([0.229, 0.224, 0.225], jnp.float32)

    out = constant_normalize(x, mean, std)
    jax.block_until_ready(out)

    # Reference semantics of the PyTorch module (broadcast over NCHW).
    ref = (x - mean.reshape(1, 3, 1, 1)) / (std.reshape(1, 3, 1, 1) + 1e-5)

    assert out.shape == x.shape
    assert out.dtype == x.dtype
    assert bool(jnp.all(jnp.isfinite(out)))
    assert bool(jnp.allclose(out, ref, atol=1e-5, rtol=1e-5))
    print("KERNEL_OK")
</pallas_src>

<mosaic_0001>
module attributes {stable_mosaic.version = 11 : i64} {
  func.func @_normalize_kernel(%arg0: i32, %arg1: i32, %arg2: memref<6x1024xf32, #tpu.memory_space<vmem>>, %arg3: memref<6x1xf32, #tpu.memory_space<vmem>>, %arg4: memref<6x1xf32, #tpu.memory_space<vmem>>, %arg5: memref<6x1024xf32, #tpu.memory_space<vmem>>) attributes {dimension_semantics = [#tpu.dimension_semantics<parallel>, #tpu.dimension_semantics<parallel>], iteration_bounds = array<i64: 1, 1>, scalar_prefetch = 0 : i64, scratch_operands = 0 : i64, tpu.core_type = #tpu.core_type<tc>, window_params = [{transform_indices = @transform_0, window_bounds = array<i64: 6, 1024>}, {transform_indices = @transform_1, window_bounds = array<i64: 6, 1>}, {transform_indices = @transform_2, window_bounds = array<i64: 6, 1>}, {transform_indices = @transform_3, window_bounds = array<i64: 6, 1024>}]} {
    %c0 = arith.constant 0 : index
    %c0_0 = arith.constant 0 : index
    %0 = vector.load %arg2[%c0, %c0_0] : memref<6x1024xf32, #tpu.memory_space<vmem>>, vector<6x1024xf32>
    %c0_1 = arith.constant 0 : index
    %c0_2 = arith.constant 0 : index
    %1 = vector.load %arg3[%c0_1, %c0_2] : memref<6x1xf32, #tpu.memory_space<vmem>>, vector<6x1xf32>
    %2 = vector.broadcast %1 : vector<6x1xf32> to vector<6x1024xf32>
    %3 = arith.mulf %0, %2 : vector<6x1024xf32>
    %c0_3 = arith.constant 0 : index
    %c0_4 = arith.constant 0 : index
    %4 = vector.load %arg4[%c0_3, %c0_4] : memref<6x1xf32, #tpu.memory_space<vmem>>, vector<6x1xf32>
    %5 = vector.broadcast %4 : vector<6x1xf32> to vector<6x1024xf32>
    %6 = arith.addf %3, %5 : vector<6x1024xf32>
    %c0_5 = arith.constant 0 : index
    %c0_6 = arith.constant 0 : index
    %7 = vector.load %arg5[%c0_5, %c0_6] : memref<6x1024xf32, #tpu.memory_space<vmem>>, vector<6x1024xf32>
    tpu.vector_store %arg5[%c0_5, %c0_6], %6 {strides = array<i32>} : memref<6x1024xf32, #tpu.memory_space<vmem>>, vector<6x1024xf32>,
    return
  }
  func.func @transform_0(%arg0: i32, %arg1: i32) -> (i32, i32) {
    %c0_i32 = arith.constant 0 : i32
    return %arg0, %arg1 : i32, i32
  }
  func.func @transform_1(%arg0: i32, %arg1: i32) -> (i32, i32) {
    %c0_i32 = arith.constant 0 : i32
    %c0_i32_0 = arith.constant 0 : i32
    return %arg0, %c0_i32 : i32, i32
  }
  func.func @transform_2(%arg0: i32, %arg1: i32) -> (i32, i32) {
    %c0_i32 = arith.constant 0 : i32
    %c0_i32_0 = arith.constant 0 : i32
    return %arg0, %c0_i32 : i32, i32
  }
  func.func @transform_3(%arg0: i32, %arg1: i32) -> (i32, i32) {
    %c0_i32 = arith.constant 0 : i32
    return %arg0, %arg1 : i32, i32
  }
}

</mosaic_0001>

<bundles_post_ra>
// kernel: tile.18
= control target key start
LH: loop header
LB: loop body
LE: loop exit
PB: predicated region body
PF: predicated region fallthrough
CT: control target
= control target key end

     0   :  { %s22_s0 = inlined_call_operand.vmem [shape: f32[3], index: 0, kind: input, shape index: {}]   ;;  %s23_s1 = inlined_call_operand.vmem [shape: f32[2,3], index: 1, kind: output, shape index: {}]  }
   0x1   :  { %v4_v0 = vld [vmem:[%s22_s0] ss:$0 sm:$0xff] }
   0x2   :  { %5 = vst [vmem:[%s23_s1] sm:$0x3] %v4_v0 }

// kernel: tile.0
= control target key start
LH: loop header
LB: loop body
LE: loop exit
PB: predicated region body
PF: predicated region fallthrough
CT: control target
= control target key end

     0   :  { %vm7_vm0 = vcmask 7168   ;;  %s26_s10 = smov 126   ;;  %s49_s0 = inlined_call_operand.vmem [shape: f32[2,3], index: 0, kind: input, shape index: {}]   ;;  %s50_s1 = inlined_call_operand.vmem [shape: f32[6,1], index: 1, kind: output, shape index: {}]  }
   0x1   :  { %v4_v0 = vld [vmem:[%s49_s0] sm:$0x3]  ;;  %s25_s0 = smov 127  }
   0x2   :  { %5 = vst [vmem:[#allocation0] sm:$0x3] %v4_v0 }
   0x9   :  { %v9_v1 = vld [vmem:[#allocation0] sm:$0x3]  }
   0xa   :  { %v6_v2 = vld [vmem:[#allocation0] sm:$0x3]   ;;  %10 = vrot.lane.b32.xlu0 %v9_v1, %s25_s0 }
   0xb   :  { %8 = vst.msk [vmem:[%s50_s1] ss:$3 sm:$0x3] %vm7_vm0, %v6_v2   ;;  %v15_v3 = vld [vmem:[#allocation0] sm:$0x3]  }
   0xe   :  { %16 = vrot.lane.b32.xlu0 %v15_v3, %s26_s10 }
  0x7c   :  { %v11_v4 = vpop.permute.xlu0 %10  }
  0x7d   :  { %21 = vst.msk [vmem:[%s50_s1 + $0x1] ss:$3 sm:$0x3] %vm7_vm0, %v11_v4  }
  0x80   :  { %v17_v5 = vpop.permute.xlu0 %16  }
  0x81   :  { %22 = vst.msk [vmem:[%s50_s1 + $0x2] ss:$3 sm:$0x3] %vm7_vm0, %v17_v5  }

</bundles_post_ra>
